<compile_context>
chip_gen: v7x
topology: tpu7x:2x2x1
jax: 0.10.0
libtpu: 0.0.40
codegen_flags: <defaults>
</compile_context>

<pallas_src>
import functools

import jax
import jax.numpy as jnp
from jax import lax
from jax.experimental import pallas as pl
from jax.experimental.pallas import tpu as pltpu

_LANES = 128
_SUBLANES = 8
_TILE = _SUBLANES * _LANES          # elements per (8,128) f32 vreg tile
_MAX_CHUNK_TILES = 256              # 256*8*128*4B = 1 MiB per input per buffer


def _num_parallel_cores():
    """2 only on dual-TensorCore-per-device chips (v4/v5p megacore, v7x); else 1."""
    try:
        kind = jax.devices()[0].device_kind.lower()
    except Exception:
        return 1
    if ("v7" in kind) or ("v5p" in kind) or ("v4" in kind):
        return 2
    return 1


def _ghm_kernel(x_ref, t_ref, lw_ref, cnt_ref, bsum_ref, *,
                bins, chunk, with_logits, unroll):
    """One grid step: fold a (chunk, 8, 128) block into per-bin (8,128) partials.

    Per-tile processing stays vreg-resident (loop-carried accumulators in a
    lax.fori_loop over the chunk axis); the resident output blocks (same block
    index across the 'arbitrary' axis) are touched once per grid step.
    """
    step = pl.program_id(1)

    def tile_body(i, carry):
        cnt_acc = carry[:bins]
        bsum_acc = carry[bins:]

        x = x_ref[i].astype(jnp.float32)          # (8, 128), vreg-resident
        t = t_ref[i].astype(jnp.float32)
        valid = lw_ref[i] > 0                     # padded samples carry label_weight == 0

        if with_logits:
            e = jnp.exp(-jnp.abs(x))              # one shared EUP exp per element
            # numerically-stable BCE with logits: max(x,0) - x*t + log(1 + exp(-|x|))
            bce = jnp.maximum(x, 0.0) - x * t + jnp.log(1.0 + e)
            # sigmoid rebuilt from the shared exp; exact divide to preserve bin parity
            recip = 1.0 / (1.0 + e)
            prob = jnp.where(x >= 0.0, recip, e * recip)
        else:
            # torch F.binary_cross_entropy clamps the log terms at -100
            bce = -(t * jnp.maximum(jnp.log(x), -100.0)
                    + (1.0 - t) * jnp.maximum(jnp.log(1.0 - x), -100.0))
            prob = x

        g = jnp.abs(prob - t)                                   # gradient norm in [0, 1]
        # uniform edges i/bins; the +1e-6 on the last edge == clamp g==1 into last bin
        gb = jnp.minimum(jnp.floor(g * bins), float(bins - 1))
        gb = jnp.where(valid, gb, float(bins))                  # invalid -> out-of-range bin

        new_cnt = []
        new_bsum = []
        for b in range(bins):                                   # static unroll; pure VPU
            mb = gb == float(b)
            new_cnt.append(cnt_acc[b] + mb.astype(jnp.float32))
            new_bsum.append(bsum_acc[b] + jnp.where(mb, bce, 0.0))
        return tuple(new_cnt) + tuple(new_bsum)

    zero = jnp.zeros((_SUBLANES, _LANES), jnp.float32)
    carry = lax.fori_loop(0, chunk, tile_body, (zero,) * (2 * bins), unroll=unroll)

    @pl.when(step == 0)
    def _store_first():                                         # no load on the first step
        for b in range(bins):
            cnt_ref[0, b] = carry[b]
            bsum_ref[0, b] = carry[bins + b]

    @pl.when(step > 0)
    def _accumulate():                                          # one RMW per step, not per tile
        for b in range(bins):
            cnt_ref[0, b] += carry[b]
            bsum_ref[0, b] += carry[bins + b]


def _expand_binary_labels(labels, label_weights, label_channels):
    # plain-JAX glue matching the torch helper (only used when pred.ndim != target.ndim)
    pos = labels >= 1
    onehot = jax.nn.one_hot(jnp.clip(labels - 1, 0, label_channels - 1),
                            label_channels, dtype=jnp.float32)
    bin_labels = jnp.where(pos[:, None], onehot, 0.0)
    bin_label_weights = jnp.broadcast_to(
        label_weights.reshape(-1, 1).astype(jnp.float32),
        (labels.shape[0], label_channels))
    return bin_labels, bin_label_weights


def ghm_loss(pred, target, label_weight, *, bins=10, momentum=0, with_logits=True):
    """GHM binary loss (momentum=0 forward path).

    Perf note: callers may pass bf16 pred/target and int8/bool label_weight; the
    kernel casts after the DMA, so narrow inputs stream less HBM traffic (biggest
    win on v5e).  Do not upcast in the wrapper.
    """
    # TODO(synk): momentum > 0 keeps a running acc_sum across calls (stateful EMA);
    #             only the default momentum=0 forward path is implemented.
    assert momentum == 0, "momentum > 0 (stateful acc_sum) not implemented"

    if pred.ndim != target.ndim:
        target, label_weight = _expand_binary_labels(target, label_weight, pred.shape[-1])

    x = pred.reshape(-1)
    t = target.reshape(-1)
    lw = label_weight.reshape(-1)

    num_cores = _num_parallel_cores()

    n_elem = x.shape[0]
    n_tiles = max(-(-n_elem // _TILE), 1)
    chunk = min(_MAX_CHUNK_TILES, -(-n_tiles // num_cores))
    steps = -(-n_tiles // (num_cores * chunk))           # grid steps per "core" slice
    n_tiles = steps * num_cores * chunk                  # round tiles up to full grid
    pad = n_tiles * _TILE - n_elem
    if pad:
        x = jnp.pad(x, (0, pad))
        t = jnp.pad(t, (0, pad))
        lw = jnp.pad(lw, (0, pad))                        # pads are invalid (weight 0)

    x = x.reshape(n_tiles, _SUBLANES, _LANES)
    t = t.reshape(n_tiles, _SUBLANES, _LANES)
    lw = lw.reshape(n_tiles, _SUBLANES, _LANES)

    unroll = 2 if chunk > 1 else 1
    kernel = functools.partial(_ghm_kernel, bins=bins, chunk=chunk,
                               with_logits=with_logits, unroll=unroll)
    in_spec = pl.BlockSpec((chunk, _SUBLANES, _LANES),
                           lambda c, s: (c * steps + s, 0, 0))
    out_spec = pl.BlockSpec((1, bins, _SUBLANES, _LANES),
                            lambda c, s: (c, 0, 0, 0))

    cnt, bsum = pl.pallas_call(
        kernel,
        out_shape=(
            jax.ShapeDtypeStruct((num_cores, bins, _SUBLANES, _LANES), jnp.float32),
            jax.ShapeDtypeStruct((num_cores, bins, _SUBLANES, _LANES), jnp.float32),
        ),
        grid_spec=pltpu.PrefetchScalarGridSpec(
            num_scalar_prefetch=0,
            grid=(num_cores, steps),
            in_specs=[in_spec, in_spec, in_spec],
            out_specs=[out_spec, out_spec],
        ),
        compiler_params=pltpu.CompilerParams(
            dimension_semantics=("parallel", "arbitrary")),
    )(x, t, lw)

    # tiny O(cores*bins) epilogue: combine (8,128) partials -> scalar loss.
    # loss = sum_b bce_sum_b / max(count_b, 1) / max(n_nonempty_bins, 1)  (tot cancels)
    counts = jnp.sum(cnt, axis=(0, 2, 3))                # (bins,)
    bsums = jnp.sum(bsum, axis=(0, 2, 3))                # (bins,)
    n = jnp.sum((counts > 0).astype(jnp.float32))        # number of non-empty bins
    loss = jnp.sum(bsums / jnp.maximum(counts, 1.0)) / jnp.maximum(n, 1.0)
    return loss


def ghm_loss_ref(pred, target, label_weight, *, bins=10, with_logits=True):
    # pure-JAX reference of the torch forward (momentum=0 path)
    edges = [float(i) / bins for i in range(bins + 1)]
    edges[-1] += 1e-6
    x = pred.astype(jnp.float32)
    t = target.astype(jnp.float32)
    lw = label_weight.astype(jnp.float32)
    prob = jax.nn.sigmoid(x) if with_logits else x
    g = jnp.abs(prob - t)
    valid = lw > 0.0
    tot = jnp.maximum(jnp.sum(valid.astype(jnp.float32)), 1.0)
    weights = jnp.zeros_like(x)
    n = 0.0
    for i in range(bins):
        inds = (g >= edges[i]) & (g < edges[i + 1]) & valid
        num_in_bin = jnp.sum(inds.astype(jnp.float32))
        has = num_in_bin > 0.0
        w_val = jnp.where(has, tot / jnp.maximum(num_in_bin, 1.0), 0.0)
        weights = jnp.where(inds, w_val, weights)
        n = n + has.astype(jnp.float32)
    weights = weights / jnp.maximum(n, 1.0)
    if with_logits:
        bce = jnp.maximum(x, 0.0) - x * t + jnp.log(1.0 + jnp.exp(-jnp.abs(x)))
    else:
        bce = -(t * jnp.maximum(jnp.log(x), -100.0)
                + (1.0 - t) * jnp.maximum(jnp.log(1.0 - x), -100.0))
    return jnp.sum(weights * bce) / tot


if __name__ == "__main__":
    key = jax.random.PRNGKey(0)
    k1, k2, k3, k4 = jax.random.split(key, 4)

    # Case 1: small batch with padding (single tile), logits input.
    N = 300
    pred = jax.random.normal(k1, (N,), dtype=jnp.float32) * 2.0             # logits
    target = jax.random.bernoulli(k2, 0.4, (N,)).astype(jnp.float32)        # binary targets
    label_weight = jax.random.bernoulli(k3, 0.9, (N,)).astype(jnp.float32)  # 1=valid, 0=ignore

    loss = jax.block_until_ready(
        ghm_loss(pred, target, label_weight, bins=10, momentum=0, with_logits=True))
    ref = ghm_loss_ref(pred, target, label_weight, bins=10, with_logits=True)
    assert jnp.allclose(loss, ref, rtol=1e-5, atol=1e-5), (loss, ref)

    # Case 2: multi-tile batch (exercises the fori_loop / chunk path), logits input.
    N2 = 3333
    pred2 = jax.random.normal(k4, (N2,), dtype=jnp.float32) * 2.0
    target2 = jax.random.bernoulli(k2, 0.4, (N2,)).astype(jnp.float32)
    label_weight2 = jax.random.bernoulli(k3, 0.9, (N2,)).astype(jnp.float32)

    loss2 = jax.block_until_ready(
        ghm_loss(pred2, target2, label_weight2, bins=10, momentum=0, with_logits=True))
    ref2 = ghm_loss_ref(pred2, target2, label_weight2, bins=10, with_logits=True)
    assert jnp.allclose(loss2, ref2, rtol=1e-5, atol=1e-5), (loss2, ref2)

    # Case 3: probability inputs (with_logits=False branch).
    prob_in = jax.nn.sigmoid(pred)
    loss3 = jax.block_until_ready(
        ghm_loss(prob_in, target, label_weight, bins=10, momentum=0, with_logits=False))
    ref3 = ghm_loss_ref(prob_in, target, label_weight, bins=10, with_logits=False)
    assert jnp.allclose(loss3, ref3, rtol=1e-5, atol=1e-5), (loss3, ref3)

    print("KERNEL_OK")
</pallas_src>

<mosaic_0001>
module attributes {stable_mosaic.version = 11 : i64} {
  func.func @_ghm_kernel(%arg0: i32, %arg1: i32, %arg2: memref<1x8x128xf32, #tpu.memory_space<vmem>>, %arg3: memref<1x8x128xf32, #tpu.memory_space<vmem>>, %arg4: memref<1x8x128xf32, #tpu.memory_space<vmem>>, %arg5: memref<1x10x8x128xf32, #tpu.memory_space<vmem>>, %arg6: memref<1x10x8x128xf32, #tpu.memory_space<vmem>>) attributes {dimension_semantics = [#tpu.dimension_semantics<parallel>, #tpu.dimension_semantics<arbitrary>], iteration_bounds = array<i64: 1, 1>, scalar_prefetch = 0 : i64, scratch_operands = 0 : i64, tpu.core_type = #tpu.core_type<tc>, window_params = [{transform_indices = @transform_0, window_bounds = array<i64: 1, 8, 128>}, {transform_indices = @transform_1, window_bounds = array<i64: 1, 8, 128>}, {transform_indices = @transform_2, window_bounds = array<i64: 1, 8, 128>}, {transform_indices = @transform_3, window_bounds = array<i64: 1, 10, 8, 128>}, {transform_indices = @transform_4, window_bounds = array<i64: 1, 10, 8, 128>}]} {
    %cst = arith.constant 0.000000e+00 : f32
    %0 = vector.broadcast %cst : f32 to vector<8x128xf32>
    %c0_i32 = arith.constant 0 : i32
    %1 = arith.index_cast %c0_i32 : i32 to index
    %c0 = arith.constant 0 : index
    %c0_0 = arith.constant 0 : index
    %2 = vector.load %arg2[%1, %c0, %c0_0] : memref<1x8x128xf32, #tpu.memory_space<vmem>>, vector<1x8x128xf32>
    %3 = vector.shape_cast %2 : vector<1x8x128xf32> to vector<8x128xf32>
    %4 = arith.index_cast %c0_i32 : i32 to index
    %c0_1 = arith.constant 0 : index
    %c0_2 = arith.constant 0 : index
    %5 = vector.load %arg3[%4, %c0_1, %c0_2] : memref<1x8x128xf32, #tpu.memory_space<vmem>>, vector<1x8x128xf32>
    %6 = vector.shape_cast %5 : vector<1x8x128xf32> to vector<8x128xf32>
    %7 = arith.index_cast %c0_i32 : i32 to index
    %c0_3 = arith.constant 0 : index
    %c0_4 = arith.constant 0 : index
    %8 = vector.load %arg4[%7, %c0_3, %c0_4] : memref<1x8x128xf32, #tpu.memory_space<vmem>>, vector<1x8x128xf32>
    %9 = vector.shape_cast %8 : vector<1x8x128xf32> to vector<8x128xf32>
    %cst_5 = arith.constant 0.000000e+00 : f32
    %10 = vector.broadcast %cst_5 : f32 to vector<8x128xf32>
    %11 = arith.cmpf ogt, %9, %10 : vector<8x128xf32>
    %12 = math.absf %3 : vector<8x128xf32>
    %cst_6 = arith.constant 0.000000e+00 : f32
    %13 = vector.broadcast %cst_6 : f32 to vector<8x128xf32>
    %14 = arith.subf %13, %12 : vector<8x128xf32>
    %15 = math.exp %14 : vector<8x128xf32>
    %cst_7 = arith.constant 0.000000e+00 : f32
    %16 = vector.broadcast %cst_7 : f32 to vector<8x128xf32>
    %17 = arith.maximumf %3, %16 : vector<8x128xf32>
    %18 = arith.mulf %3, %6 : vector<8x128xf32>
    %19 = arith.subf %17, %18 : vector<8x128xf32>
    %cst_8 = arith.constant 1.000000e+00 : f32
    %20 = vector.broadcast %cst_8 : f32 to vector<8x128xf32>
    %21 = arith.addf %20, %15 : vector<8x128xf32>
    %22 = math.log %21 : vector<8x128xf32>
    %23 = arith.addf %19, %22 : vector<8x128xf32>
    %cst_9 = arith.constant 1.000000e+00 : f32
    %24 = vector.broadcast %cst_9 : f32 to vector<8x128xf32>
    %25 = arith.addf %24, %15 : vector<8x128xf32>
    %cst_10 = arith.constant 1.000000e+00 : f32
    %26 = vector.broadcast %cst_10 : f32 to vector<8x128xf32>
    %27 = arith.divf %26, %25 : vector<8x128xf32>
    %cst_11 = arith.constant 0.000000e+00 : f32
    %28 = vector.broadcast %cst_11 : f32 to vector<8x128xf32>
    %29 = arith.cmpf oge, %3, %28 : vector<8x128xf32>
    %30 = arith.mulf %15, %27 : vector<8x128xf32>
    %31 = arith.select %29, %27, %30 : vector<8x128xi1>, vector<8x128xf32>
    %32 = arith.subf %31, %6 : vector<8x128xf32>
    %33 = math.absf %32 : vector<8x128xf32>
    %cst_12 = arith.constant 1.000000e+01 : f32
    %34 = vector.broadcast %cst_12 : f32 to vector<8x128xf32>
    %35 = arith.mulf %33, %34 : vector<8x128xf32>
    %36 = math.floor %35 : vector<8x128xf32>
    %cst_13 = arith.constant 9.000000e+00 : f32
    %37 = vector.broadcast %cst_13 : f32 to vector<8x128xf32>
    %38 = arith.minimumf %36, %37 : vector<8x128xf32>
    %cst_14 = arith.constant 1.000000e+01 : f32
    %39 = vector.broadcast %cst_14 : f32 to vector<8x128xf32>
    %40 = arith.select %11, %38, %39 : vector<8x128xi1>, vector<8x128xf32>
    %cst_15 = arith.constant 0.000000e+00 : f32
    %41 = vector.broadcast %cst_15 : f32 to vector<8x128xf32>
    %42 = arith.cmpf oeq, %40, %41 : vector<8x128xf32>
    %43 = arith.extui %42 : vector<8x128xi1> to vector<8x128xi32>
    %44 = arith.sitofp %43 : vector<8x128xi32> to vector<8x128xf32>
    %45 = arith.addf %0, %44 : vector<8x128xf32>
    %cst_16 = arith.constant 0.000000e+00 : f32
    %46 = vector.broadcast %cst_16 : f32 to vector<8x128xf32>
    %47 = arith.select %42, %23, %46 : vector<8x128xi1>, vector<8x128xf32>
    %48 = arith.addf %0, %47 : vector<8x128xf32>
    %cst_17 = arith.constant 1.000000e+00 : f32
    %49 = vector.broadcast %cst_17 : f32 to vector<8x128xf32>
    %50 = arith.cmpf oeq, %40, %49 : vector<8x128xf32>
    %51 = arith.extui %50 : vector<8x128xi1> to vector<8x128xi32>
    %52 = arith.sitofp %51 : vector<8x128xi32> to vector<8x128xf32>
    %53 = arith.addf %0, %52 : vector<8x128xf32>
    %cst_18 = arith.constant 0.000000e+00 : f32
    %54 = vector.broadcast %cst_18 : f32 to vector<8x128xf32>
    %55 = arith.select %50, %23, %54 : vector<8x128xi1>, vector<8x128xf32>
    %56 = arith.addf %0, %55 : vector<8x128xf32>
    %cst_19 = arith.constant 2.000000e+00 : f32
    %57 = vector.broadcast %cst_19 : f32 to vector<8x128xf32>
    %58 = arith.cmpf oeq, %40, %57 : vector<8x128xf32>
    %59 = arith.extui %58 : vector<8x128xi1> to vector<8x128xi32>
    %60 = arith.sitofp %59 : vector<8x128xi32> to vector<8x128xf32>
    %61 = arith.addf %0, %60 : vector<8x128xf32>
    %cst_20 = arith.constant 0.000000e+00 : f32
    %62 = vector.broadcast %cst_20 : f32 to vector<8x128xf32>
    %63 = arith.select %58, %23, %62 : vector<8x128xi1>, vector<8x128xf32>
    %64 = arith.addf %0, %63 : vector<8x128xf32>
    %cst_21 = arith.constant 3.000000e+00 : f32
    %65 = vector.broadcast %cst_21 : f32 to vector<8x128xf32>
    %66 = arith.cmpf oeq, %40, %65 : vector<8x128xf32>
    %67 = arith.extui %66 : vector<8x128xi1> to vector<8x128xi32>
    %68 = arith.sitofp %67 : vector<8x128xi32> to vector<8x128xf32>
    %69 = arith.addf %0, %68 : vector<8x128xf32>
    %cst_22 = arith.constant 0.000000e+00 : f32
    %70 = vector.broadcast %cst_22 : f32 to vector<8x128xf32>
    %71 = arith.select %66, %23, %70 : vector<8x128xi1>, vector<8x128xf32>
    %72 = arith.addf %0, %71 : vector<8x128xf32>
    %cst_23 = arith.constant 4.000000e+00 : f32
    %73 = vector.broadcast %cst_23 : f32 to vector<8x128xf32>
    %74 = arith.cmpf oeq, %40, %73 : vector<8x128xf32>
    %75 = arith.extui %74 : vector<8x128xi1> to vector<8x128xi32>
    %76 = arith.sitofp %75 : vector<8x128xi32> to vector<8x128xf32>
    %77 = arith.addf %0, %76 : vector<8x128xf32>
    %cst_24 = arith.constant 0.000000e+00 : f32
    %78 = vector.broadcast %cst_24 : f32 to vector<8x128xf32>
    %79 = arith.select %74, %23, %78 : vector<8x128xi1>, vector<8x128xf32>
    %80 = arith.addf %0, %79 : vector<8x128xf32>
    %cst_25 = arith.constant 5.000000e+00 : f32
    %81 = vector.broadcast %cst_25 : f32 to vector<8x128xf32>
    %82 = arith.cmpf oeq, %40, %81 : vector<8x128xf32>
    %83 = arith.extui %82 : vector<8x128xi1> to vector<8x128xi32>
    %84 = arith.sitofp %83 : vector<8x128xi32> to vector<8x128xf32>
    %85 = arith.addf %0, %84 : vector<8x128xf32>
    %cst_26 = arith.constant 0.000000e+00 : f32
    %86 = vector.broadcast %cst_26 : f32 to vector<8x128xf32>
    %87 = arith.select %82, %23, %86 : vector<8x128xi1>, vector<8x128xf32>
    %88 = arith.addf %0, %87 : vector<8x128xf32>
    %cst_27 = arith.constant 6.000000e+00 : f32
    %89 = vector.broadcast %cst_27 : f32 to vector<8x128xf32>
    %90 = arith.cmpf oeq, %40, %89 : vector<8x128xf32>
    %91 = arith.extui %90 : vector<8x128xi1> to vector<8x128xi32>
    %92 = arith.sitofp %91 : vector<8x128xi32> to vector<8x128xf32>
    %93 = arith.addf %0, %92 : vector<8x128xf32>
    %cst_28 = arith.constant 0.000000e+00 : f32
    %94 = vector.broadcast %cst_28 : f32 to vector<8x128xf32>
    %95 = arith.select %90, %23, %94 : vector<8x128xi1>, vector<8x128xf32>
    %96 = arith.addf %0, %95 : vector<8x128xf32>
    %cst_29 = arith.constant 7.000000e+00 : f32
    %97 = vector.broadcast %cst_29 : f32 to vector<8x128xf32>
    %98 = arith.cmpf oeq, %40, %97 : vector<8x128xf32>
    %99 = arith.extui %98 : vector<8x128xi1> to vector<8x128xi32>
    %100 = arith.sitofp %99 : vector<8x128xi32> to vector<8x128xf32>
    %101 = arith.addf %0, %100 : vector<8x128xf32>
    %cst_30 = arith.constant 0.000000e+00 : f32
    %102 = vector.broadcast %cst_30 : f32 to vector<8x128xf32>
    %103 = arith.select %98, %23, %102 : vector<8x128xi1>, vector<8x128xf32>
    %104 = arith.addf %0, %103 : vector<8x128xf32>
    %cst_31 = arith.constant 8.000000e+00 : f32
    %105 = vector.broadcast %cst_31 : f32 to vector<8x128xf32>
    %106 = arith.cmpf oeq, %40, %105 : vector<8x128xf32>
    %107 = arith.extui %106 : vector<8x128xi1> to vector<8x128xi32>
    %108 = arith.sitofp %107 : vector<8x128xi32> to vector<8x128xf32>
    %109 = arith.addf %0, %108 : vector<8x128xf32>
    %cst_32 = arith.constant 0.000000e+00 : f32
    %110 = vector.broadcast %cst_32 : f32 to vector<8x128xf32>
    %111 = arith.select %106, %23, %110 : vector<8x128xi1>, vector<8x128xf32>
    %112 = arith.addf %0, %111 : vector<8x128xf32>
    %cst_33 = arith.constant 9.000000e+00 : f32
    %113 = vector.broadcast %cst_33 : f32 to vector<8x128xf32>
    %114 = arith.cmpf oeq, %40, %113 : vector<8x128xf32>
    %115 = arith.extui %114 : vector<8x128xi1> to vector<8x128xi32>
    %116 = arith.sitofp %115 : vector<8x128xi32> to vector<8x128xf32>
    %117 = arith.addf %0, %116 : vector<8x128xf32>
    %cst_34 = arith.constant 0.000000e+00 : f32
    %118 = vector.broadcast %cst_34 : f32 to vector<8x128xf32>
    %119 = arith.select %114, %23, %118 : vector<8x128xi1>, vector<8x128xf32>
    %120 = arith.addf %0, %119 : vector<8x128xf32>
    %c1_i32 = arith.constant 1 : i32
    %c0_i32_35 = arith.constant 0 : i32
    %121 = arith.cmpi eq, %arg1, %c0_i32_35 : i32
    %122 = arith.extui %121 : i1 to i32
    %c0_i32_36 = arith.constant 0 : i32
    %123 = arith.cmpi ne, %122, %c0_i32_36 : i32
    scf.if %123 {
      %c0_39 = arith.constant 0 : index
      %c0_40 = arith.constant 0 : index
      %c0_41 = arith.constant 0 : index
      %c0_42 = arith.constant 0 : index
      %127 = vector.load %arg5[%c0_39, %c0_40, %c0_41, %c0_42] : memref<1x10x8x128xf32, #tpu.memory_space<vmem>>, vector<1x1x8x128xf32>
      %128 = vector.shape_cast %127 : vector<1x1x8x128xf32> to vector<8x128xf32>
      %129 = vector.shape_cast %45 : vector<8x128xf32> to vector<1x1x8x128xf32>
      tpu.vector_store %arg5[%c0_39, %c0_40, %c0_41, %c0_42], %129 {strides = array<i32>} : memref<1x10x8x128xf32, #tpu.memory_space<vmem>>, vector<1x1x8x128xf32>,
      %c0_43 = arith.constant 0 : index
      %c0_44 = arith.constant 0 : index
      %c0_45 = arith.constant 0 : index
      %c0_46 = arith.constant 0 : index
      %130 = vector.load %arg6[%c0_43, %c0_44, %c0_45, %c0_46] : memref<1x10x8x128xf32, #tpu.memory_space<vmem>>, vector<1x1x8x128xf32>
      %131 = vector.shape_cast %130 : vector<1x1x8x128xf32> to vector<8x128xf32>
      %132 = vector.shape_cast %48 : vector<8x128xf32> to vector<1x1x8x128xf32>
      tpu.vector_store %arg6[%c0_43, %c0_44, %c0_45, %c0_46], %132 {strides = array<i32>} : memref<1x10x8x128xf32, #tpu.memory_space<vmem>>, vector<1x1x8x128xf32>,
      %c0_47 = arith.constant 0 : index
      %c1 = arith.constant 1 : index
      %c0_48 = arith.constant 0 : index
      %c0_49 = arith.constant 0 : index
      %133 = vector.load %arg5[%c0_47, %c1, %c0_48, %c0_49] : memref<1x10x8x128xf32, #tpu.memory_space<vmem>>, vector<1x1x8x128xf32>
      %134 = vector.shape_cast %133 : vector<1x1x8x128xf32> to vector<8x128xf32>
      %135 = vector.shape_cast %53 : vector<8x128xf32> to vector<1x1x8x128xf32>
      tpu.vector_store %arg5[%c0_47, %c1, %c0_48, %c0_49], %135 {strides = array<i32>} : memref<1x10x8x128xf32, #tpu.memory_space<vmem>>, vector<1x1x8x128xf32>,
      %c0_50 = arith.constant 0 : index
      %c1_51 = arith.constant 1 : index
      %c0_52 = arith.constant 0 : index
      %c0_53 = arith.constant 0 : index
      %136 = vector.load %arg6[%c0_50, %c1_51, %c0_52, %c0_53] : memref<1x10x8x128xf32, #tpu.memory_space<vmem>>, vector<1x1x8x128xf32>
      %137 = vector.shape_cast %136 : vector<1x1x8x128xf32> to vector<8x128xf32>
      %138 = vector.shape_cast %56 : vector<8x128xf32> to vector<1x1x8x128xf32>
      tpu.vector_store %arg6[%c0_50, %c1_51, %c0_52, %c0_53], %138 {strides = array<i32>} : memref<1x10x8x128xf32, #tpu.memory_space<vmem>>, vector<1x1x8x128xf32>,
      %c0_54 = arith.constant 0 : index
      %c2 = arith.constant 2 : index
      %c0_55 = arith.constant 0 : index
      %c0_56 = arith.constant 0 : index
      %139 = vector.load %arg5[%c0_54, %c2, %c0_55, %c0_56] : memref<1x10x8x128xf32, #tpu.memory_space<vmem>>, vector<1x1x8x128xf32>
      %140 = vector.shape_cast %139 : vector<1x1x8x128xf32> to vector<8x128xf32>
      %141 = vector.shape_cast %61 : vector<8x128xf32> to vector<1x1x8x128xf32>
      tpu.vector_store %arg5[%c0_54, %c2, %c0_55, %c0_56], %141 {strides = array<i32>} : memref<1x10x8x128xf32, #tpu.memory_space<vmem>>, vector<1x1x8x128xf32>,
      %c0_57 = arith.constant 0 : index
      %c2_58 = arith.constant 2 : index
      %c0_59 = arith.constant 0 : index
      %c0_60 = arith.constant 0 : index
      %142 = vector.load %arg6[%c0_57, %c2_58, %c0_59, %c0_60] : memref<1x10x8x128xf32, #tpu.memory_space<vmem>>, vector<1x1x8x128xf32>
      %143 = vector.shape_cast %142 : vector<1x1x8x128xf32> to vector<8x128xf32>
      %144 = vector.shape_cast %64 : vector<8x128xf32> to vector<1x1x8x128xf32>
      tpu.vector_store %arg6[%c0_57, %c2_58, %c0_59, %c0_60], %144 {strides = array<i32>} : memref<1x10x8x128xf32, #tpu.memory_space<vmem>>, vector<1x1x8x128xf32>,
      %c0_61 = arith.constant 0 : index
      %c3 = arith.constant 3 : index
      %c0_62 = arith.constant 0 : index
      %c0_63 = arith.constant 0 : index
      %145 = vector.load %arg5[%c0_61, %c3, %c0_62, %c0_63] : memref<1x10x8x128xf32, #tpu.memory_space<vmem>>, vector<1x1x8x128xf32>
      %146 = vector.shape_cast %145 : vector<1x1x8x128xf32> to vector<8x128xf32>
      %147 = vector.shape_cast %69 : vector<8x128xf32> to vector<1x1x8x128xf32>
      tpu.vector_store %arg5[%c0_61, %c3, %c0_62, %c0_63], %147 {strides = array<i32>} : memref<1x10x8x128xf32, #tpu.memory_space<vmem>>, vector<1x1x8x128xf32>,
      %c0_64 = arith.constant 0 : index
      %c3_65 = arith.constant 3 : index
      %c0_66 = arith.constant 0 : index
      %c0_67 = arith.constant 0 : index
      %148 = vector.load %arg6[%c0_64, %c3_65, %c0_66, %c0_67] : memref<1x10x8x128xf32, #tpu.memory_space<vmem>>, vector<1x1x8x128xf32>
      %149 = vector.shape_cast %148 : vector<1x1x8x128xf32> to vector<8x128xf32>
      %150 = vector.shape_cast %72 : vector<8x128xf32> to vector<1x1x8x128xf32>
      tpu.vector_store %arg6[%c0_64, %c3_65, %c0_66, %c0_67], %150 {strides = array<i32>} : memref<1x10x8x128xf32, #tpu.memory_space<vmem>>, vector<1x1x8x128xf32>,
      %c0_68 = arith.constant 0 : index
      %c4 = arith.constant 4 : index
      %c0_69 = arith.constant 0 : index
      %c0_70 = arith.constant 0 : index
      %151 = vector.load %arg5[%c0_68, %c4, %c0_69, %c0_70] : memref<1x10x8x128xf32, #tpu.memory_space<vmem>>, vector<1x1x8x128xf32>
      %152 = vector.shape_cast %151 : vector<1x1x8x128xf32> to vector<8x128xf32>
      %153 = vector.shape_cast %77 : vector<8x128xf32> to vector<1x1x8x128xf32>
      tpu.vector_store %arg5[%c0_68, %c4, %c0_69, %c0_70], %153 {strides = array<i32>} : memref<1x10x8x128xf32, #tpu.memory_space<vmem>>, vector<1x1x8x128xf32>,
      %c0_71 = arith.constant 0 : index
      %c4_72 = arith.constant 4 : index
      %c0_73 = arith.constant 0 : index
      %c0_74 = arith.constant 0 : index
      %154 = vector.load %arg6[%c0_71, %c4_72, %c0_73, %c0_74] : memref<1x10x8x128xf32, #tpu.memory_space<vmem>>, vector<1x1x8x128xf32>
      %155 = vector.shape_cast %154 : vector<1x1x8x128xf32> to vector<8x128xf32>
      %156 = vector.shape_cast %80 : vector<8x128xf32> to vector<1x1x8x128xf32>
      tpu.vector_store %arg6[%c0_71, %c4_72, %c0_73, %c0_74], %156 {strides = array<i32>} : memref<1x10x8x128xf32, #tpu.memory_space<vmem>>, vector<1x1x8x128xf32>,
      %c0_75 = arith.constant 0 : index
      %c5 = arith.constant 5 : index
      %c0_76 = arith.constant 0 : index
      %c0_77 = arith.constant 0 : index
      %157 = vector.load %arg5[%c0_75, %c5, %c0_76, %c0_77] : memref<1x10x8x128xf32, #tpu.memory_space<vmem>>, vector<1x1x8x128xf32>
      %158 = vector.shape_cast %157 : vector<1x1x8x128xf32> to vector<8x128xf32>
      %159 = vector.shape_cast %85 : vector<8x128xf32> to vector<1x1x8x128xf32>
      tpu.vector_store %arg5[%c0_75, %c5, %c0_76, %c0_77], %159 {strides = array<i32>} : memref<1x10x8x128xf32, #tpu.memory_space<vmem>>, vector<1x1x8x128xf32>,
      %c0_78 = arith.constant 0 : index
      %c5_79 = arith.constant 5 : index
      %c0_80 = arith.constant 0 : index
      %c0_81 = arith.constant 0 : index
      %160 = vector.load %arg6[%c0_78, %c5_79, %c0_80, %c0_81] : memref<1x10x8x128xf32, #tpu.memory_space<vmem>>, vector<1x1x8x128xf32>
      %161 = vector.shape_cast %160 : vector<1x1x8x128xf32> to vector<8x128xf32>
      %162 = vector.shape_cast %88 : vector<8x128xf32> to vector<1x1x8x128xf32>
      tpu.vector_store %arg6[%c0_78, %c5_79, %c0_80, %c0_81], %162 {strides = array<i32>} : memref<1x10x8x128xf32, #tpu.memory_space<vmem>>, vector<1x1x8x128xf32>,
      %c0_82 = arith.constant 0 : index
      %c6 = arith.constant 6 : index
      %c0_83 = arith.constant 0 : index
      %c0_84 = arith.constant 0 : index
      %163 = vector.load %arg5[%c0_82, %c6, %c0_83, %c0_84] : memref<1x10x8x128xf32, #tpu.memory_space<vmem>>, vector<1x1x8x128xf32>
      %164 = vector.shape_cast %163 : vector<1x1x8x128xf32> to vector<8x128xf32>
      %165 = vector.shape_cast %93 : vector<8x128xf32> to vector<1x1x8x128xf32>
      tpu.vector_store %arg5[%c0_82, %c6, %c0_83, %c0_84], %165 {strides = array<i32>} : memref<1x10x8x128xf32, #tpu.memory_space<vmem>>, vector<1x1x8x128xf32>,
      %c0_85 = arith.constant 0 : index
      %c6_86 = arith.constant 6 : index
      %c0_87 = arith.constant 0 : index
      %c0_88 = arith.constant 0 : index
      %166 = vector.load %arg6[%c0_85, %c6_86, %c0_87, %c0_88] : memref<1x10x8x128xf32, #tpu.memory_space<vmem>>, vector<1x1x8x128xf32>
      %167 = vector.shape_cast %166 : vector<1x1x8x128xf32> to vector<8x128xf32>
      %168 = vector.shape_cast %96 : vector<8x128xf32> to vector<1x1x8x128xf32>
      tpu.vector_store %arg6[%c0_85, %c6_86, %c0_87, %c0_88], %168 {strides = array<i32>} : memref<1x10x8x128xf32, #tpu.memory_space<vmem>>, vector<1x1x8x128xf32>,
      %c0_89 = arith.constant 0 : index
      %c7 = arith.constant 7 : index
      %c0_90 = arith.constant 0 : index
      %c0_91 = arith.constant 0 : index
      %169 = vector.load %arg5[%c0_89, %c7, %c0_90, %c0_91] : memref<1x10x8x128xf32, #tpu.memory_space<vmem>>, vector<1x1x8x128xf32>
      %170 = vector.shape_cast %169 : vector<1x1x8x128xf32> to vector<8x128xf32>
      %171 = vector.shape_cast %101 : vector<8x128xf32> to vector<1x1x8x128xf32>
      tpu.vector_store %arg5[%c0_89, %c7, %c0_90, %c0_91], %171 {strides = array<i32>} : memref<1x10x8x128xf32, #tpu.memory_space<vmem>>, vector<1x1x8x128xf32>,
      %c0_92 = arith.constant 0 : index
      %c7_93 = arith.constant 7 : index
      %c0_94 = arith.constant 0 : index
      %c0_95 = arith.constant 0 : index
      %172 = vector.load %arg6[%c0_92, %c7_93, %c0_94, %c0_95] : memref<1x10x8x128xf32, #tpu.memory_space<vmem>>, vector<1x1x8x128xf32>
      %173 = vector.shape_cast %172 : vector<1x1x8x128xf32> to vector<8x128xf32>
      %174 = vector.shape_cast %104 : vector<8x128xf32> to vector<1x1x8x128xf32>
      tpu.vector_store %arg6[%c0_92, %c7_93, %c0_94, %c0_95], %174 {strides = array<i32>} : memref<1x10x8x128xf32, #tpu.memory_space<vmem>>, vector<1x1x8x128xf32>,
      %c0_96 = arith.constant 0 : index
      %c8 = arith.constant 8 : index
      %c0_97 = arith.constant 0 : index
      %c0_98 = arith.constant 0 : index
      %175 = vector.load %arg5[%c0_96, %c8, %c0_97, %c0_98] : memref<1x10x8x128xf32, #tpu.memory_space<vmem>>, vector<1x1x8x128xf32>
      %176 = vector.shape_cast %175 : vector<1x1x8x128xf32> to vector<8x128xf32>
      %177 = vector.shape_cast %109 : vector<8x128xf32> to vector<1x1x8x128xf32>
      tpu.vector_store %arg5[%c0_96, %c8, %c0_97, %c0_98], %177 {strides = array<i32>} : memref<1x10x8x128xf32, #tpu.memory_space<vmem>>, vector<1x1x8x128xf32>,
      %c0_99 = arith.constant 0 : index
      %c8_100 = arith.constant 8 : index
      %c0_101 = arith.constant 0 : index
      %c0_102 = arith.constant 0 : index
      %178 = vector.load %arg6[%c0_99, %c8_100, %c0_101, %c0_102] : memref<1x10x8x128xf32, #tpu.memory_space<vmem>>, vector<1x1x8x128xf32>
      %179 = vector.shape_cast %178 : vector<1x1x8x128xf32> to vector<8x128xf32>
      %180 = vector.shape_cast %112 : vector<8x128xf32> to vector<1x1x8x128xf32>
      tpu.vector_store %arg6[%c0_99, %c8_100, %c0_101, %c0_102], %180 {strides = array<i32>} : memref<1x10x8x128xf32, #tpu.memory_space<vmem>>, vector<1x1x8x128xf32>,
      %c0_103 = arith.constant 0 : index
      %c9 = arith.constant 9 : index
      %c0_104 = arith.constant 0 : index
      %c0_105 = arith.constant 0 : index
      %181 = vector.load %arg5[%c0_103, %c9, %c0_104, %c0_105] : memref<1x10x8x128xf32, #tpu.memory_space<vmem>>, vector<1x1x8x128xf32>
      %182 = vector.shape_cast %181 : vector<1x1x8x128xf32> to vector<8x128xf32>
      %183 = vector.shape_cast %117 : vector<8x128xf32> to vector<1x1x8x128xf32>
      tpu.vector_store %arg5[%c0_103, %c9, %c0_104, %c0_105], %183 {strides = array<i32>} : memref<1x10x8x128xf32, #tpu.memory_space<vmem>>, vector<1x1x8x128xf32>,
      %c0_106 = arith.constant 0 : index
      %c9_107 = arith.constant 9 : index
      %c0_108 = arith.constant 0 : index
      %c0_109 = arith.constant 0 : index
      %184 = vector.load %arg6[%c0_106, %c9_107, %c0_108, %c0_109] : memref<1x10x8x128xf32, #tpu.memory_space<vmem>>, vector<1x1x8x128xf32>
      %185 = vector.shape_cast %184 : vector<1x1x8x128xf32> to vector<8x128xf32>
      %186 = vector.shape_cast %120 : vector<8x128xf32> to vector<1x1x8x128xf32>
      tpu.vector_store %arg6[%c0_106, %c9_107, %c0_108, %c0_109], %186 {strides = array<i32>} : memref<1x10x8x128xf32, #tpu.memory_space<vmem>>, vector<1x1x8x128xf32>,
    } else {
    }
    %c0_i32_37 = arith.constant 0 : i32
    %124 = arith.cmpi sgt, %arg1, %c0_i32_37 : i32
    %125 = arith.extui %124 : i1 to i32
    %c0_i32_38 = arith.constant 0 : i32
    %126 = arith.cmpi ne, %125, %c0_i32_38 : i32
    scf.if %126 {
      %c0_39 = arith.constant 0 : index
      %c0_40 = arith.constant 0 : index
      %c0_41 = arith.constant 0 : index
      %c0_42 = arith.constant 0 : index
      %127 = vector.load %arg5[%c0_39, %c0_40, %c0_41, %c0_42] : memref<1x10x8x128xf32, #tpu.memory_space<vmem>>, vector<1x1x8x128xf32>
      %128 = vector.shape_cast %127 : vector<1x1x8x128xf32> to vector<8x128xf32>
      %129 = arith.addf %128, %45 : vector<8x128xf32>
      %c0_43 = arith.constant 0 : index
      %c0_44 = arith.constant 0 : index
      %c0_45 = arith.constant 0 : index
      %c0_46 = arith.constant 0 : index
      %130 = vector.load %arg5[%c0_43, %c0_44, %c0_45, %c0_46] : memref<1x10x8x128xf32, #tpu.memory_space<vmem>>, vector<1x1x8x128xf32>
      %131 = vector.shape_cast %130 : vector<1x1x8x128xf32> to vector<8x128xf32>
      %132 = vector.shape_cast %129 : vector<8x128xf32> to vector<1x1x8x128xf32>
      tpu.vector_store %arg5[%c0_43, %c0_44, %c0_45, %c0_46], %132 {strides = array<i32>} : memref<1x10x8x128xf32, #tpu.memory_space<vmem>>, vector<1x1x8x128xf32>,
      %c0_47 = arith.constant 0 : index
      %c0_48 = arith.constant 0 : index
      %c0_49 = arith.constant 0 : index
      %c0_50 = arith.constant 0 : index
      %133 = vector.load %arg6[%c0_47, %c0_48, %c0_49, %c0_50] : memref<1x10x8x128xf32, #tpu.memory_space<vmem>>, vector<1x1x8x128xf32>
      %134 = vector.shape_cast %133 : vector<1x1x8x128xf32> to vector<8x128xf32>
      %135 = arith.addf %134, %48 : vector<8x128xf32>
      %c0_51 = arith.constant 0 : index
      %c0_52 = arith.constant 0 : index
      %c0_53 = arith.constant 0 : index
      %c0_54 = arith.constant 0 : index
      %136 = vector.load %arg6[%c0_51, %c0_52, %c0_53, %c0_54] : memref<1x10x8x128xf32, #tpu.memory_space<vmem>>, vector<1x1x8x128xf32>
      %137 = vector.shape_cast %136 : vector<1x1x8x128xf32> to vector<8x128xf32>
      %138 = vector.shape_cast %135 : vector<8x128xf32> to vector<1x1x8x128xf32>
      tpu.vector_store %arg6[%c0_51, %c0_52, %c0_53, %c0_54], %138 {strides = array<i32>} : memref<1x10x8x128xf32, #tpu.memory_space<vmem>>, vector<1x1x8x128xf32>,
      %c0_55 = arith.constant 0 : index
      %c1 = arith.constant 1 : index
      %c0_56 = arith.constant 0 : index
      %c0_57 = arith.constant 0 : index
      %139 = vector.load %arg5[%c0_55, %c1, %c0_56, %c0_57] : memref<1x10x8x128xf32, #tpu.memory_space<vmem>>, vector<1x1x8x128xf32>
      %140 = vector.shape_cast %139 : vector<1x1x8x128xf32> to vector<8x128xf32>
      %141 = arith.addf %140, %53 : vector<8x128xf32>
      %c0_58 = arith.constant 0 : index
      %c1_59 = arith.constant 1 : index
      %c0_60 = arith.constant 0 : index
      %c0_61 = arith.constant 0 : index
      %142 = vector.load %arg5[%c0_58, %c1_59, %c0_60, %c0_61] : memref<1x10x8x128xf32, #tpu.memory_space<vmem>>, vector<1x1x8x128xf32>
      %143 = vector.shape_cast %142 : vector<1x1x8x128xf32> to vector<8x128xf32>
      %144 = vector.shape_cast %141 : vector<8x128xf32> to vector<1x1x8x128xf32>
      tpu.vector_store %arg5[%c0_58, %c1_59, %c0_60, %c0_61], %144 {strides = array<i32>} : memref<1x10x8x128xf32, #tpu.memory_space<vmem>>, vector<1x1x8x128xf32>,
      %c0_62 = arith.constant 0 : index
      %c1_63 = arith.constant 1 : index
      %c0_64 = arith.constant 0 : index
      %c0_65 = arith.constant 0 : index
      %145 = vector.load %arg6[%c0_62, %c1_63, %c0_64, %c0_65] : memref<1x10x8x128xf32, #tpu.memory_space<vmem>>, vector<1x1x8x128xf32>
      %146 = vector.shape_cast %145 : vector<1x1x8x128xf32> to vector<8x128xf32>
      %147 = arith.addf %146, %56 : vector<8x128xf32>
      %c0_66 = arith.constant 0 : index
      %c1_67 = arith.constant 1 : index
      %c0_68 = arith.constant 0 : index
      %c0_69 = arith.constant 0 : index
      %148 = vector.load %arg6[%c0_66, %c1_67, %c0_68, %c0_69] : memref<1x10x8x128xf32, #tpu.memory_space<vmem>>, vector<1x1x8x128xf32>
      %149 = vector.shape_cast %148 : vector<1x1x8x128xf32> to vector<8x128xf32>
      %150 = vector.shape_cast %147 : vector<8x128xf32> to vector<1x1x8x128xf32>
      tpu.vector_store %arg6[%c0_66, %c1_67, %c0_68, %c0_69], %150 {strides = array<i32>} : memref<1x10x8x128xf32, #tpu.memory_space<vmem>>, vector<1x1x8x128xf32>,
      %c0_70 = arith.constant 0 : index
      %c2 = arith.constant 2 : index
      %c0_71 = arith.constant 0 : index
      %c0_72 = arith.constant 0 : index
      %151 = vector.load %arg5[%c0_70, %c2, %c0_71, %c0_72] : memref<1x10x8x128xf32, #tpu.memory_space<vmem>>, vector<1x1x8x128xf32>
      %152 = vector.shape_cast %151 : vector<1x1x8x128xf32> to vector<8x128xf32>
      %153 = arith.addf %152, %61 : vector<8x128xf32>
      %c0_73 = arith.constant 0 : index
      %c2_74 = arith.constant 2 : index
      %c0_75 = arith.constant 0 : index
      %c0_76 = arith.constant 0 : index
      %154 = vector.load %arg5[%c0_73, %c2_74, %c0_75, %c0_76] : memref<1x10x8x128xf32, #tpu.memory_space<vmem>>, vector<1x1x8x128xf32>
      %155 = vector.shape_cast %154 : vector<1x1x8x128xf32> to vector<8x128xf32>
      %156 = vector.shape_cast %153 : vector<8x128xf32> to vector<1x1x8x128xf32>
      tpu.vector_store %arg5[%c0_73, %c2_74, %c0_75, %c0_76], %156 {strides = array<i32>} : memref<1x10x8x128xf32, #tpu.memory_space<vmem>>, vector<1x1x8x128xf32>,
      %c0_77 = arith.constant 0 : index
      %c2_78 = arith.constant 2 : index
      %c0_79 = arith.constant 0 : index
      %c0_80 = arith.constant 0 : index
      %157 = vector.load %arg6[%c0_77, %c2_78, %c0_79, %c0_80] : memref<1x10x8x128xf32, #tpu.memory_space<vmem>>, vector<1x1x8x128xf32>
      %158 = vector.shape_cast %157 : vector<1x1x8x128xf32> to vector<8x128xf32>
      %159 = arith.addf %158, %64 : vector<8x128xf32>
      %c0_81 = arith.constant 0 : index
      %c2_82 = arith.constant 2 : index
      %c0_83 = arith.constant 0 : index
      %c0_84 = arith.constant 0 : index
      %160 = vector.load %arg6[%c0_81, %c2_82, %c0_83, %c0_84] : memref<1x10x8x128xf32, #tpu.memory_space<vmem>>, vector<1x1x8x128xf32>
      %161 = vector.shape_cast %160 : vector<1x1x8x128xf32> to vector<8x128xf32>
      %162 = vector.shape_cast %159 : vector<8x128xf32> to vector<1x1x8x128xf32>
      tpu.vector_store %arg6[%c0_81, %c2_82, %c0_83, %c0_84], %162 {strides = array<i32>} : memref<1x10x8x128xf32, #tpu.memory_space<vmem>>, vector<1x1x8x128xf32>,
      %c0_85 = arith.constant 0 : index
      %c3 = arith.constant 3 : index
      %c0_86 = arith.constant 0 : index
      %c0_87 = arith.constant 0 : index
      %163 = vector.load %arg5[%c0_85, %c3, %c0_86, %c0_87] : memref<1x10x8x128xf32, #tpu.memory_space<vmem>>, vector<1x1x8x128xf32>
      %164 = vector.shape_cast %163 : vector<1x1x8x128xf32> to vector<8x128xf32>
      %165 = arith.addf %164, %69 : vector<8x128xf32>
      %c0_88 = arith.constant 0 : index
      %c3_89 = arith.constant 3 : index
      %c0_90 = arith.constant 0 : index
      %c0_91 = arith.constant 0 : index
      %166 = vector.load %arg5[%c0_88, %c3_89, %c0_90, %c0_91] : memref<1x10x8x128xf32, #tpu.memory_space<vmem>>, vector<1x1x8x128xf32>
      %167 = vector.shape_cast %166 : vector<1x1x8x128xf32> to vector<8x128xf32>
      %168 = vector.shape_cast %165 : vector<8x128xf32> to vector<1x1x8x128xf32>
      tpu.vector_store %arg5[%c0_88, %c3_89, %c0_90, %c0_91], %168 {strides = array<i32>} : memref<1x10x8x128xf32, #tpu.memory_space<vmem>>, vector<1x1x8x128xf32>,
      %c0_92 = arith.constant 0 : index
      %c3_93 = arith.constant 3 : index
      %c0_94 = arith.constant 0 : index
      %c0_95 = arith.constant 0 : index
      %169 = vector.load %arg6[%c0_92, %c3_93, %c0_94, %c0_95] : memref<1x10x8x128xf32, #tpu.memory_space<vmem>>, vector<1x1x8x128xf32>
      %170 = vector.shape_cast %169 : vector<1x1x8x128xf32> to vector<8x128xf32>
      %171 = arith.addf %170, %72 : vector<8x128xf32>
      %c0_96 = arith.constant 0 : index
      %c3_97 = arith.constant 3 : index
      %c0_98 = arith.constant 0 : index
      %c0_99 = arith.constant 0 : index
      %172 = vector.load %arg6[%c0_96, %c3_97, %c0_98, %c0_99] : memref<1x10x8x128xf32, #tpu.memory_space<vmem>>, vector<1x1x8x128xf32>
      %173 = vector.shape_cast %172 : vector<1x1x8x128xf32> to vector<8x128xf32>
      %174 = vector.shape_cast %171 : vector<8x128xf32> to vector<1x1x8x128xf32>
      tpu.vector_store %arg6[%c0_96, %c3_97, %c0_98, %c0_99], %174 {strides = array<i32>} : memref<1x10x8x128xf32, #tpu.memory_space<vmem>>, vector<1x1x8x128xf32>,
      %c0_100 = arith.constant 0 : index
      %c4 = arith.constant 4 : index
      %c0_101 = arith.constant 0 : index
      %c0_102 = arith.constant 0 : index
      %175 = vector.load %arg5[%c0_100, %c4, %c0_101, %c0_102] : memref<1x10x8x128xf32, #tpu.memory_space<vmem>>, vector<1x1x8x128xf32>
      %176 = vector.shape_cast %175 : vector<1x1x8x128xf32> to vector<8x128xf32>
      %177 = arith.addf %176, %77 : vector<8x128xf32>
      %c0_103 = arith.constant 0 : index
      %c4_104 = arith.constant 4 : index
      %c0_105 = arith.constant 0 : index
      %c0_106 = arith.constant 0 : index
      %178 = vector.load %arg5[%c0_103, %c4_104, %c0_105, %c0_106] : memref<1x10x8x128xf32, #tpu.memory_space<vmem>>, vector<1x1x8x128xf32>
      %179 = vector.shape_cast %178 : vector<1x1x8x128xf32> to vector<8x128xf32>
      %180 = vector.shape_cast %177 : vector<8x128xf32> to vector<1x1x8x128xf32>
      tpu.vector_store %arg5[%c0_103, %c4_104, %c0_105, %c0_106], %180 {strides = array<i32>} : memref<1x10x8x128xf32, #tpu.memory_space<vmem>>, vector<1x1x8x128xf32>,
      %c0_107 = arith.constant 0 : index
      %c4_108 = arith.constant 4 : index
      %c0_109 = arith.constant 0 : index
      %c0_110 = arith.constant 0 : index
      %181 = vector.load %arg6[%c0_107, %c4_108, %c0_109, %c0_110] : memref<1x10x8x128xf32, #tpu.memory_space<vmem>>, vector<1x1x8x128xf32>
      %182 = vector.shape_cast %181 : vector<1x1x8x128xf32> to vector<8x128xf32>
      %183 = arith.addf %182, %80 : vector<8x128xf32>
      %c0_111 = arith.constant 0 : index
      %c4_112 = arith.constant 4 : index
      %c0_113 = arith.constant 0 : index
      %c0_114 = arith.constant 0 : index
      %184 = vector.load %arg6[%c0_111, %c4_112, %c0_113, %c0_114] : memref<1x10x8x128xf32, #tpu.memory_space<vmem>>, vector<1x1x8x128xf32>
      %185 = vector.shape_cast %184 : vector<1x1x8x128xf32> to vector<8x128xf32>
      %186 = vector.shape_cast %183 : vector<8x128xf32> to vector<1x1x8x128xf32>
      tpu.vector_store %arg6[%c0_111, %c4_112, %c0_113, %c0_114], %186 {strides = array<i32>} : memref<1x10x8x128xf32, #tpu.memory_space<vmem>>, vector<1x1x8x128xf32>,
      %c0_115 = arith.constant 0 : index
      %c5 = arith.constant 5 : index
      %c0_116 = arith.constant 0 : index
      %c0_117 = arith.constant 0 : index
      %187 = vector.load %arg5[%c0_115, %c5, %c0_116, %c0_117] : memref<1x10x8x128xf32, #tpu.memory_space<vmem>>, vector<1x1x8x128xf32>
      %188 = vector.shape_cast %187 : vector<1x1x8x128xf32> to vector<8x128xf32>
      %189 = arith.addf %188, %85 : vector<8x128xf32>
      %c0_118 = arith.constant 0 : index
      %c5_119 = arith.constant 5 : index
      %c0_120 = arith.constant 0 : index
      %c0_121 = arith.constant 0 : index
      %190 = vector.load %arg5[%c0_118, %c5_119, %c0_120, %c0_121] : memref<1x10x8x128xf32, #tpu.memory_space<vmem>>, vector<1x1x8x128xf32>
      %191 = vector.shape_cast %190 : vector<1x1x8x128xf32> to vector<8x128xf32>
      %192 = vector.shape_cast %189 : vector<8x128xf32> to vector<1x1x8x128xf32>
      tpu.vector_store %arg5[%c0_118, %c5_119, %c0_120, %c0_121], %192 {strides = array<i32>} : memref<1x10x8x128xf32, #tpu.memory_space<vmem>>, vector<1x1x8x128xf32>,
      %c0_122 = arith.constant 0 : index
      %c5_123 = arith.constant 5 : index
      %c0_124 = arith.constant 0 : index
      %c0_125 = arith.constant 0 : index
      %193 = vector.load %arg6[%c0_122, %c5_123, %c0_124, %c0_125] : memref<1x10x8x128xf32, #tpu.memory_space<vmem>>, vector<1x1x8x128xf32>
      %194 = vector.shape_cast %193 : vector<1x1x8x128xf32> to vector<8x128xf32>
      %195 = arith.addf %194, %88 : vector<8x128xf32>
      %c0_126 = arith.constant 0 : index
      %c5_127 = arith.constant 5 : index
      %c0_128 = arith.constant 0 : index
      %c0_129 = arith.constant 0 : index
      %196 = vector.load %arg6[%c0_126, %c5_127, %c0_128, %c0_129] : memref<1x10x8x128xf32, #tpu.memory_space<vmem>>, vector<1x1x8x128xf32>
      %197 = vector.shape_cast %196 : vector<1x1x8x128xf32> to vector<8x128xf32>
      %198 = vector.shape_cast %195 : vector<8x128xf32> to vector<1x1x8x128xf32>
      tpu.vector_store %arg6[%c0_126, %c5_127, %c0_128, %c0_129], %198 {strides = array<i32>} : memref<1x10x8x128xf32, #tpu.memory_space<vmem>>, vector<1x1x8x128xf32>,
      %c0_130 = arith.constant 0 : index
      %c6 = arith.constant 6 : index
      %c0_131 = arith.constant 0 : index
      %c0_132 = arith.constant 0 : index
      %199 = vector.load %arg5[%c0_130, %c6, %c0_131, %c0_132] : memref<1x10x8x128xf32, #tpu.memory_space<vmem>>, vector<1x1x8x128xf32>
      %200 = vector.shape_cast %199 : vector<1x1x8x128xf32> to vector<8x128xf32>
      %201 = arith.addf %200, %93 : vector<8x128xf32>
      %c0_133 = arith.constant 0 : index
      %c6_134 = arith.constant 6 : index
      %c0_135 = arith.constant 0 : index
      %c0_136 = arith.constant 0 : index
      %202 = vector.load %arg5[%c0_133, %c6_134, %c0_135, %c0_136] : memref<1x10x8x128xf32, #tpu.memory_space<vmem>>, vector<1x1x8x128xf32>
      %203 = vector.shape_cast %202 : vector<1x1x8x128xf32> to vector<8x128xf32>
      %204 = vector.shape_cast %201 : vector<8x128xf32> to vector<1x1x8x128xf32>
      tpu.vector_store %arg5[%c0_133, %c6_134, %c0_135, %c0_136], %204 {strides = array<i32>} : memref<1x10x8x128xf32, #tpu.memory_space<vmem>>, vector<1x1x8x128xf32>,
      %c0_137 = arith.constant 0 : index
      %c6_138 = arith.constant 6 : index
      %c0_139 = arith.constant 0 : index
      %c0_140 = arith.constant 0 : index
      %205 = vector.load %arg6[%c0_137, %c6_138, %c0_139, %c0_140] : memref<1x10x8x128xf32, #tpu.memory_space<vmem>>, vector<1x1x8x128xf32>
      %206 = vector.shape_cast %205 : vector<1x1x8x128xf32> to vector<8x128xf32>
      %207 = arith.addf %206, %96 : vector<8x128xf32>
      %c0_141 = arith.constant 0 : index
      %c6_142 = arith.constant 6 : index
      %c0_143 = arith.constant 0 : index
      %c0_144 = arith.constant 0 : index
      %208 = vector.load %arg6[%c0_141, %c6_142, %c0_143, %c0_144] : memref<1x10x8x128xf32, #tpu.memory_space<vmem>>, vector<1x1x8x128xf32>
      %209 = vector.shape_cast %208 : vector<1x1x8x128xf32> to vector<8x128xf32>
      %210 = vector.shape_cast %207 : vector<8x128xf32> to vector<1x1x8x128xf32>
      tpu.vector_store %arg6[%c0_141, %c6_142, %c0_143, %c0_144], %210 {strides = array<i32>} : memref<1x10x8x128xf32, #tpu.memory_space<vmem>>, vector<1x1x8x128xf32>,
      %c0_145 = arith.constant 0 : index
      %c7 = arith.constant 7 : index
      %c0_146 = arith.constant 0 : index
      %c0_147 = arith.constant 0 : index
      %211 = vector.load %arg5[%c0_145, %c7, %c0_146, %c0_147] : memref<1x10x8x128xf32, #tpu.memory_space<vmem>>, vector<1x1x8x128xf32>
      %212 = vector.shape_cast %211 : vector<1x1x8x128xf32> to vector<8x128xf32>
      %213 = arith.addf %212, %101 : vector<8x128xf32>
      %c0_148 = arith.constant 0 : index
      %c7_149 = arith.constant 7 : index
      %c0_150 = arith.constant 0 : index
      %c0_151 = arith.constant 0 : index
      %214 = vector.load %arg5[%c0_148, %c7_149, %c0_150, %c0_151] : memref<1x10x8x128xf32, #tpu.memory_space<vmem>>, vector<1x1x8x128xf32>
      %215 = vector.shape_cast %214 : vector<1x1x8x128xf32> to vector<8x128xf32>
      %216 = vector.shape_cast %213 : vector<8x128xf32> to vector<1x1x8x128xf32>
      tpu.vector_store %arg5[%c0_148, %c7_149, %c0_150, %c0_151], %216 {strides = array<i32>} : memref<1x10x8x128xf32, #tpu.memory_space<vmem>>, vector<1x1x8x128xf32>,
      %c0_152 = arith.constant 0 : index
      %c7_153 = arith.constant 7 : index
      %c0_154 = arith.constant 0 : index
      %c0_155 = arith.constant 0 : index
      %217 = vector.load %arg6[%c0_152, %c7_153, %c0_154, %c0_155] : memref<1x10x8x128xf32, #tpu.memory_space<vmem>>, vector<1x1x8x128xf32>
      %218 = vector.shape_cast %217 : vector<1x1x8x128xf32> to vector<8x128xf32>
      %219 = arith.addf %218, %104 : vector<8x128xf32>
      %c0_156 = arith.constant 0 : index
      %c7_157 = arith.constant 7 : index
      %c0_158 = arith.constant 0 : index
      %c0_159 = arith.constant 0 : index
      %220 = vector.load %arg6[%c0_156, %c7_157, %c0_158, %c0_159] : memref<1x10x8x128xf32, #tpu.memory_space<vmem>>, vector<1x1x8x128xf32>
      %221 = vector.shape_cast %220 : vector<1x1x8x128xf32> to vector<8x128xf32>
      %222 = vector.shape_cast %219 : vector<8x128xf32> to vector<1x1x8x128xf32>
      tpu.vector_store %arg6[%c0_156, %c7_157, %c0_158, %c0_159], %222 {strides = array<i32>} : memref<1x10x8x128xf32, #tpu.memory_space<vmem>>, vector<1x1x8x128xf32>,
      %c0_160 = arith.constant 0 : index
      %c8 = arith.constant 8 : index
      %c0_161 = arith.constant 0 : index
      %c0_162 = arith.constant 0 : index
      %223 = vector.load %arg5[%c0_160, %c8, %c0_161, %c0_162] : memref<1x10x8x128xf32, #tpu.memory_space<vmem>>, vector<1x1x8x128xf32>
      %224 = vector.shape_cast %223 : vector<1x1x8x128xf32> to vector<8x128xf32>
      %225 = arith.addf %224, %109 : vector<8x128xf32>
      %c0_163 = arith.constant 0 : index
      %c8_164 = arith.constant 8 : index
      %c0_165 = arith.constant 0 : index
      %c0_166 = arith.constant 0 : index
      %226 = vector.load %arg5[%c0_163, %c8_164, %c0_165, %c0_166] : memref<1x10x8x128xf32, #tpu.memory_space<vmem>>, vector<1x1x8x128xf32>
      %227 = vector.shape_cast %226 : vector<1x1x8x128xf32> to vector<8x128xf32>
      %228 = vector.shape_cast %225 : vector<8x128xf32> to vector<1x1x8x128xf32>
      tpu.vector_store %arg5[%c0_163, %c8_164, %c0_165, %c0_166], %228 {strides = array<i32>} : memref<1x10x8x128xf32, #tpu.memory_space<vmem>>, vector<1x1x8x128xf32>,
      %c0_167 = arith.constant 0 : index
      %c8_168 = arith.constant 8 : index
      %c0_169 = arith.constant 0 : index
      %c0_170 = arith.constant 0 : index
      %229 = vector.load %arg6[%c0_167, %c8_168, %c0_169, %c0_170] : memref<1x10x8x128xf32, #tpu.memory_space<vmem>>, vector<1x1x8x128xf32>
      %230 = vector.shape_cast %229 : vector<1x1x8x128xf32> to vector<8x128xf32>
      %231 = arith.addf %230, %112 : vector<8x128xf32>
      %c0_171 = arith.constant 0 : index
      %c8_172 = arith.constant 8 : index
      %c0_173 = arith.constant 0 : index
      %c0_174 = arith.constant 0 : index
      %232 = vector.load %arg6[%c0_171, %c8_172, %c0_173, %c0_174] : memref<1x10x8x128xf32, #tpu.memory_space<vmem>>, vector<1x1x8x128xf32>
      %233 = vector.shape_cast %232 : vector<1x1x8x128xf32> to vector<8x128xf32>
      %234 = vector.shape_cast %231 : vector<8x128xf32> to vector<1x1x8x128xf32>
      tpu.vector_store %arg6[%c0_171, %c8_172, %c0_173, %c0_174], %234 {strides = array<i32>} : memref<1x10x8x128xf32, #tpu.memory_space<vmem>>, vector<1x1x8x128xf32>,
      %c0_175 = arith.constant 0 : index
      %c9 = arith.constant 9 : index
      %c0_176 = arith.constant 0 : index
      %c0_177 = arith.constant 0 : index
      %235 = vector.load %arg5[%c0_175, %c9, %c0_176, %c0_177] : memref<1x10x8x128xf32, #tpu.memory_space<vmem>>, vector<1x1x8x128xf32>
      %236 = vector.shape_cast %235 : vector<1x1x8x128xf32> to vector<8x128xf32>
      %237 = arith.addf %236, %117 : vector<8x128xf32>
      %c0_178 = arith.constant 0 : index
      %c9_179 = arith.constant 9 : index
      %c0_180 = arith.constant 0 : index
      %c0_181 = arith.constant 0 : index
      %238 = vector.load %arg5[%c0_178, %c9_179, %c0_180, %c0_181] : memref<1x10x8x128xf32, #tpu.memory_space<vmem>>, vector<1x1x8x128xf32>
      %239 = vector.shape_cast %238 : vector<1x1x8x128xf32> to vector<8x128xf32>
      %240 = vector.shape_cast %237 : vector<8x128xf32> to vector<1x1x8x128xf32>
      tpu.vector_store %arg5[%c0_178, %c9_179, %c0_180, %c0_181], %240 {strides = array<i32>} : memref<1x10x8x128xf32, #tpu.memory_space<vmem>>, vector<1x1x8x128xf32>,
      %c0_182 = arith.constant 0 : index
      %c9_183 = arith.constant 9 : index
      %c0_184 = arith.constant 0 : index
      %c0_185 = arith.constant 0 : index
      %241 = vector.load %arg6[%c0_182, %c9_183, %c0_184, %c0_185] : memref<1x10x8x128xf32, #tpu.memory_space<vmem>>, vector<1x1x8x128xf32>
      %242 = vector.shape_cast %241 : vector<1x1x8x128xf32> to vector<8x128xf32>
      %243 = arith.addf %242, %120 : vector<8x128xf32>
      %c0_186 = arith.constant 0 : index
      %c9_187 = arith.constant 9 : index
      %c0_188 = arith.constant 0 : index
      %c0_189 = arith.constant 0 : index
      %244 = vector.load %arg6[%c0_186, %c9_187, %c0_188, %c0_189] : memref<1x10x8x128xf32, #tpu.memory_space<vmem>>, vector<1x1x8x128xf32>
      %245 = vector.shape_cast %244 : vector<1x1x8x128xf32> to vector<8x128xf32>
      %246 = vector.shape_cast %243 : vector<8x128xf32> to vector<1x1x8x128xf32>
      tpu.vector_store %arg6[%c0_186, %c9_187, %c0_188, %c0_189], %246 {strides = array<i32>} : memref<1x10x8x128xf32, #tpu.memory_space<vmem>>, vector<1x1x8x128xf32>,
    } else {
    }
    return
  }
  func.func @transform_0(%arg0: i32, %arg1: i32) -> (i32, i32, i32) {
    %c1_i32 = arith.constant 1 : i32
    %0 = arith.muli %arg0, %c1_i32 : i32
    %1 = arith.addi %0, %arg1 : i32
    %c0_i32 = arith.constant 0 : i32
    %c0_i32_0 = arith.constant 0 : i32
    %c0_i32_1 = arith.constant 0 : i32
    return %1, %c0_i32, %c0_i32_0 : i32, i32, i32
  }
  func.func @transform_1(%arg0: i32, %arg1: i32) -> (i32, i32, i32) {
    %c1_i32 = arith.constant 1 : i32
    %0 = arith.muli %arg0, %c1_i32 : i32
    %1 = arith.addi %0, %arg1 : i32
    %c0_i32 = arith.constant 0 : i32
    %c0_i32_0 = arith.constant 0 : i32
    %c0_i32_1 = arith.constant 0 : i32
    return %1, %c0_i32, %c0_i32_0 : i32, i32, i32
  }
  func.func @transform_2(%arg0: i32, %arg1: i32) -> (i32, i32, i32) {
    %c1_i32 = arith.constant 1 : i32
    %0 = arith.muli %arg0, %c1_i32 : i32
    %1 = arith.addi %0, %arg1 : i32
    %c0_i32 = arith.constant 0 : i32
    %c0_i32_0 = arith.constant 0 : i32
    %c0_i32_1 = arith.constant 0 : i32
    return %1, %c0_i32, %c0_i32_0 : i32, i32, i32
  }
  func.func @transform_3(%arg0: i32, %arg1: i32) -> (i32, i32, i32, i32) {
    %c0_i32 = arith.constant 0 : i32
    %c0_i32_0 = arith.constant 0 : i32
    %c0_i32_1 = arith.constant 0 : i32
    %c0_i32_2 = arith.constant 0 : i32
    return %arg0, %c0_i32, %c0_i32_0, %c0_i32_1 : i32, i32, i32, i32
  }
  func.func @transform_4(%arg0: i32, %arg1: i32) -> (i32, i32, i32, i32) {
    %c0_i32 = arith.constant 0 : i32
    %c0_i32_0 = arith.constant 0 : i32
    %c0_i32_1 = arith.constant 0 : i32
    %c0_i32_2 = arith.constant 0 : i32
    return %arg0, %c0_i32, %c0_i32_0, %c0_i32_1 : i32, i32, i32, i32
  }
}

</mosaic_0001>

<bundles_post_ra>
// kernel: tpu_custom_call.1
= control target key start
LH: loop header
LB: loop body
LE: loop exit
PB: predicated region body
PF: predicated region fallthrough
CT: control target
= control target key end

     0   :  { %10 = vsyncpa [#allocation3], 0  ;;  %s553_s0 = inlined_call_operand.hbm [shape: f32[1,8,128], index: 0, kind: input, shape index: {}]   ;;  %s554_s1 = inlined_call_operand.hbm [shape: f32[1,8,128], index: 1, kind: input, shape index: {}]   ;;  %s555_s2 = inlined_call_operand.hbm [shape: f32[1,8,128], index: 2, kind: input, shape index: {}]   ;;  %s556_s3 = inlined_call_operand.hbm [shape: f32[1,10,8,128], index: 3, kind: output, shape index: {0}]   ;;  %s557_s4 = inlined_call_operand.hbm [shape: f32[1,10,8,128], index: 4, kind: output, shape index: {1}]  }
   0x1   :  { %11 = vsyncpa [#allocation6], 0 }
   0x2   :  { %12 = vsyncpa [#allocation4], 0 }
   0x3   :  { %13 = vsyncpa [#allocation10], 0  ;;  %s451_s15 = smov [#allocation5]   ;;  %s452_s17 = smov [#allocation2]  }
   0x4   :  { %s36_s16 = sshll.u32 %s451_s15, 4  ;;  %s23_s18 = sshll.u32 %s452_s17, 4  ;;  %s37_s16 = int_to_ptr.vmem [resolvable:$true] %s36_s16  ;;  %s24_s18 = int_to_ptr.vmem [resolvable:$true] %s23_s18 }
   0x5   :  { %s333_s21 = scalar_lea.hbm %s554_s1, 128 }
   0x6   :  { %p334_p0 = scmp.ne.s32.totalorder %s554_s1, %s333_s21  ;;  %p337_p1 = scmp.lt.u32.totalorder %s333_s21, %s554_s1 }
   0x8   :  { %p339_p2 = pnand %p337_p1, %p334_p0 }
   0xa   :  { %342 = shalt.err (!%p339_p2)
}
   0xb   :  { %s343_s26 = scalar_lea.vmem %s37_s16, 128  ;;  %p348_p4 = scmp.lt.s32.totalorder %s37_s16, %s37_s16 }
   0xc   :  { %p344_p3 = scmp.ne.s32.totalorder %s37_s16, %s343_s26  ;;  %p349_p5 = scmp.lt.s32.totalorder %s343_s26, %s343_s26 }
   0xe   :  { %p350_p6 = por %p349_p5, %p348_p4 }
  0x10   :  { %p351_p7 = pnand %p350_p6, %p344_p3 }
  0x12   :  { %354 = shalt.err (!%p351_p7)
}
  0x13   :  { %39 = dma.hbm_to_vmem [thread:$0]  %s554_s1, 128, %s37_s16, [#allocation6]  }
  0x14   :  { %s355_s5 = scalar_lea.hbm %s553_s0, 128 }
  0x15   :  { %p356_p8 = scmp.ne.s32.totalorder %s553_s0, %s355_s5  ;;  %p359_p9 = scmp.lt.u32.totalorder %s355_s5, %s553_s0 }
  0x17   :  { %p361_p10 = pnand %p359_p9, %p356_p8 }
  0x19   :  { %364 = shalt.err (!%p361_p10)
}
  0x1a   :  { %s365_s10 = scalar_lea.vmem %s24_s18, 128  ;;  %p370_p12 = scmp.lt.s32.totalorder %s24_s18, %s24_s18 }
  0x1b   :  { %p366_p11 = scmp.ne.s32.totalorder %s24_s18, %s365_s10  ;;  %p371_p13 = scmp.lt.s32.totalorder %s365_s10, %s365_s10 }
  0x1d   :  { %p372_p0 = por %p371_p13, %p370_p12 }
  0x1f   :  { %p373_p1 = pnand %p372_p0, %p366_p11 }
  0x21   :  { %376 = shalt.err (!%p373_p1)
}
  0x22   :  { %26 = dma.hbm_to_vmem [thread:$0]  %s553_s0, 128, %s24_s18, [#allocation3]  }
  0x23   :  { %s453_s12 = smov [#allocation7]   ;;  %s377_s16 = scalar_lea.hbm %s555_s2, 128 }
  0x24   :  { %s49_s13 = sshll.u32 %s453_s12, 4  ;;  %p378_p2 = scmp.ne.s32.totalorder %s555_s2, %s377_s16  ;;  %s50_s13 = int_to_ptr.vmem [resolvable:$true] %s49_s13 }
  0x25   :  { %p381_p3 = scmp.lt.u32.totalorder %s377_s16, %s555_s2 }
  0x27   :  { %p383_p4 = pnand %p381_p3, %p378_p2 }
  0x29   :  { %386 = shalt.err (!%p383_p4)
}
  0x2a   :  { %s387_s22 = scalar_lea.vmem %s50_s13, 128  ;;  %p392_p6 = scmp.lt.s32.totalorder %s50_s13, %s50_s13 }
  0x2b   :  { %p388_p5 = scmp.ne.s32.totalorder %s50_s13, %s387_s22  ;;  %p393_p7 = scmp.lt.s32.totalorder %s387_s22, %s387_s22 }
  0x2d   :  { %p394_p8 = por %p393_p7, %p392_p6 }
  0x2f   :  { %p395_p9 = pnand %p394_p8, %p388_p5 }
  0x31   :  { %398 = shalt.err (!%p395_p9)
}
  0x32   :  { %52 = dma.hbm_to_vmem [thread:$0]  %s555_s2, 128, %s50_s13, [#allocation6]  }
  0x33   :  { %443 = dma.done.wait [#allocation3], 128  }
  0x34   :  { %444 = vsyncadd [#allocation3], 4294967168 }
  0x35   :  { %445 = dma.done.wait [#allocation6], 256  }
  0x36   :  { %446 = vsyncadd [#allocation6], 4294967040  ;;  %v65_v0 = vld [vmem:[#allocation2] sm:$0xff]  ;;  %v66_v7 = vld [vmem:[#allocation5] sm:$0xff]  ;;  %v454_v23 = vmov 0.0   ;;  %s455_s2 = smov [#allocation8]  }
  0x37   :  { %v69_v1 = vand.u32 2147483647, %v65_v0  ;;  %vm82_vm0 = vcmp.ge.f32.partialorder %v65_v0, 0.0  ;;  %v73_v10 = vmax.f32 %v65_v0, 0.0  ;;  %v74_v11 = vmul.f32 %v66_v7, %v65_v0  ;;  %v67_v15 = vld [vmem:[#allocation7] sm:$0xff]  ;;  %s280_s23 = sshll.u32 %s455_s2, 4  ;;  %s281_s23 = int_to_ptr.vmem [resolvable:$true] %s280_s23 }
  0x38   :  { %vm68_vm1 = vcmp.gt.f32.partialorder %v67_v15, 0.0  ;;  %s456_s24 = smov [#allocation9]   ;;  %s399_s26 = scalar_lea.vmem %s281_s23, 1280 }
  0x39   :  { %v70_v2 = vsub.f32 0.0, %v69_v1  ;;  %v75_v16 = vsub.f32 %v73_v10, %v74_v11  ;;  %s292_s25 = sshll.u32 %s456_s24, 4  ;;  %p400_p10 = scmp.ne.s32.totalorder %s281_s23, %s399_s26  ;;  %s522_s25 = int_to_ptr.vmem [resolvable:$true] %s292_s25 }
  0x3a   :  { %p404_p11 = scmp.lt.s32.totalorder %s281_s23, %s281_s23  ;;  %p405_p12 = scmp.lt.s32.totalorder %s399_s26, %s399_s26 }
  0x3b   :  { %v71_v3 = vmul.f32 1.442695, %v70_v2 }
  0x3c   :  { %p406_p13 = por %p405_p12, %p404_p11 }
  0x3d   :  { %327 = vpow2.f32 %v71_v3 }
  0x3e   :  { %p407_p0 = pnand %p406_p13, %p400_p10 }
  0x47   :  { %v328_v4 = vpop.eup %327 }
  0x48   :  { %v76_v5 = vadd.f32 1.0, %v328_v4 }
  0x4a   :  { %329 = vrcp.f32 %v76_v5 }
  0x4b   :  { %331 = vlog2.f32 %v76_v5 }
  0x54   :  { %v330_v6 = vpop.eup %329 }
  0x55   :  { %v83_v8 = vmul.f32 %v330_v6, %v328_v4  ;;  %v332_v13 = vpop.eup %331 }
  0x56   :  { %v78_v17 = vmul.f32 0.6931472, %v332_v13 }
  0x57   :  { %v84_v9 = vsel %vm82_vm0, %v330_v6, %v83_v8 }
  0x58   :  { %v85_v12 = vsub.f32 %v84_v9, %v66_v7  ;;  %v79_v20 = vadd.f32 %v78_v17, %v75_v16 }
  0x5a   :  { %v86_v14 = vand.u32 2147483647, %v85_v12 }
  0x5c   :  { %v87_v18 = vmul.f32 10.0, %v86_v14 }
  0x5e   :  { %v88_v19 = vfloor.f32 %v87_v18 }
  0x60   :  { %v89_v21 = vmin.f32 %v88_v19, 9.0 }
  0x62   :  { %v90_v22 = vsel %vm68_vm1, %v89_v21, 10.0 }
  0x63   :  { %vm91_vm2 = vcmp.eq.f32.partialorder %v90_v22, 0.0  ;;  %vm97_vm3 = vcmp.eq.f32.partialorder %v90_v22, 1.0  ;;  %vm103_vm4 = vcmp.eq.f32.partialorder %v90_v22, 2.0  ;;  %vm109_vm5 = vcmp.eq.f32.partialorder %v90_v22, 3.0 }
  0x64   :  { %v309_v24 = vsel %vm91_vm2, 1.0, %v454_v23  ;;  %v95_v25 = vsel %vm91_vm2, %v79_v20, 0.0  ;;  %v310_v26 = vsel %vm97_vm3, 1.0, %v454_v23  ;;  %v101_v27 = vsel %vm97_vm3, %v79_v20, 0.0 }
  0x65   :  { %155 = vst [vmem:[#allocation8] sm:$0xff] %v309_v24  ;;  %156 = vst [vmem:[#allocation9] sm:$0xff] %v95_v25  ;;  %v311_v28 = vsel %vm103_vm4, 1.0, %v454_v23  ;;  %v107_v29 = vsel %vm103_vm4, %v79_v20, 0.0  ;;  %v312_v30 = vsel %vm109_vm5, 1.0, %v454_v23  ;;  %v113_v31 = vsel %vm109_vm5, %v79_v20, 0.0 }
  0x66   :  { %158 = vst [vmem:[#allocation8 + $0x8] sm:$0xff] %v310_v26  ;;  %160 = vst [vmem:[#allocation9 + $0x8] sm:$0xff] %v101_v27  ;;  %vm115_vm6 = vcmp.eq.f32.partialorder %v90_v22, 4.0  ;;  %vm121_vm7 = vcmp.eq.f32.partialorder %v90_v22, 5.0  ;;  %vm127_vm8 = vcmp.eq.f32.partialorder %v90_v22, 6.0  ;;  %vm133_vm9 = vcmp.eq.f32.partialorder %v90_v22, 7.0 }
  0x67   :  { %162 = vst [vmem:[#allocation8 + $0x10] sm:$0xff] %v311_v28  ;;  %164 = vst [vmem:[#allocation9 + $0x10] sm:$0xff] %v107_v29  ;;  %v313_v32 = vsel %vm115_vm6, 1.0, %v454_v23  ;;  %v119_v33 = vsel %vm115_vm6, %v79_v20, 0.0  ;;  %v314_v34 = vsel %vm121_vm7, 1.0, %v454_v23  ;;  %v125_v35 = vsel %vm121_vm7, %v79_v20, 0.0 }
  0x68   :  { %166 = vst [vmem:[#allocation8 + $0x18] sm:$0xff] %v312_v30  ;;  %168 = vst [vmem:[#allocation9 + $0x18] sm:$0xff] %v113_v31  ;;  %v315_v36 = vsel %vm127_vm8, 1.0, %v454_v23  ;;  %v131_v37 = vsel %vm127_vm8, %v79_v20, 0.0  ;;  %v316_v38 = vsel %vm133_vm9, 1.0, %v454_v23  ;;  %v137_v39 = vsel %vm133_vm9, %v79_v20, 0.0 }
  0x69   :  { %170 = vst [vmem:[#allocation8 + $0x20] sm:$0xff] %v313_v32  ;;  %172 = vst [vmem:[#allocation9 + $0x20] sm:$0xff] %v119_v33  ;;  %vm139_vm10 = vcmp.eq.f32.partialorder %v90_v22, 8.0  ;;  %vm145_vm11 = vcmp.eq.f32.partialorder %v90_v22, 9.0 }
  0x6a   :  { %174 = vst [vmem:[#allocation8 + $0x28] sm:$0xff] %v314_v34  ;;  %176 = vst [vmem:[#allocation9 + $0x28] sm:$0xff] %v125_v35  ;;  %v317_v40 = vsel %vm139_vm10, 1.0, %v454_v23  ;;  %v143_v41 = vsel %vm139_vm10, %v79_v20, 0.0  ;;  %v318_v42 = vsel %vm145_vm11, 1.0, %v454_v23  ;;  %v149_v43 = vsel %vm145_vm11, %v79_v20, 0.0 }
  0x6b   :  { %178 = vst [vmem:[#allocation8 + $0x30] sm:$0xff] %v315_v36  ;;  %180 = vst [vmem:[#allocation9 + $0x30] sm:$0xff] %v131_v37 }
  0x6c   :  { %182 = vst [vmem:[#allocation8 + $0x38] sm:$0xff] %v316_v38  ;;  %184 = vst [vmem:[#allocation9 + $0x38] sm:$0xff] %v137_v39 }
  0x6d   :  { %186 = vst [vmem:[#allocation8 + $0x40] sm:$0xff] %v317_v40  ;;  %188 = vst [vmem:[#allocation9 + $0x40] sm:$0xff] %v143_v41 }
  0x6e   :  { %190 = vst [vmem:[#allocation8 + $0x48] sm:$0xff] %v318_v42  ;;  %192 = vst [vmem:[#allocation9 + $0x48] sm:$0xff] %v149_v43 }
  0x6f   :  { %410 = shalt.err (!%p407_p0)
}
  0x70   :  { %s411_s29 = scalar_lea.hbm %s556_s3, 1280 }
  0x71   :  { %p412_p1 = scmp.ne.s32.totalorder %s556_s3, %s411_s29  ;;  %p415_p2 = scmp.lt.u32.totalorder %s411_s29, %s556_s3 }
  0x73   :  { %p417_p3 = pnand %p415_p2, %p412_p1 }
  0x75   :  { %420 = shalt.err (!%p417_p3)
}
  0x76   :  { %s457_s8 = smov 128   ;;  %s458_s9 = smov 8  }
  0x77   :  { %286 = dma.vmem_to_hbm [thread:$0]  %s281_s23, 1280, %s556_s3, [#allocation4], %s457_s8, %s457_s8, %s458_s9  }
  0x78   :  { %s421_s11 = scalar_lea.vmem %s522_s25, 1280  ;;  %p426_p5 = scmp.lt.s32.totalorder %s522_s25, %s522_s25 }
  0x79   :  { %p422_p4 = scmp.ne.s32.totalorder %s522_s25, %s421_s11  ;;  %p427_p6 = scmp.lt.s32.totalorder %s421_s11, %s421_s11 }
  0x7b   :  { %p428_p7 = por %p427_p6, %p426_p5 }
  0x7d   :  { %p429_p8 = pnand %p428_p7, %p422_p4 }
  0x7f   :  { %432 = shalt.err (!%p429_p8)
}
  0x80   :  { %s433_s14 = scalar_lea.hbm %s557_s4, 1280 }
  0x81   :  { %p434_p9 = scmp.ne.s32.totalorder %s557_s4, %s433_s14  ;;  %p437_p10 = scmp.lt.u32.totalorder %s433_s14, %s557_s4 }
  0x83   :  { %p439_p11 = pnand %p437_p10, %p434_p9 }
  0x85   :  { %442 = shalt.err (!%p439_p11)
}
  0x86   :  { %298 = dma.vmem_to_hbm [thread:$0]  %s522_s25, 1280, %s557_s4, [#allocation10], %s457_s8, %s457_s8, %s458_s9  }
  0x87   :  { %447 = dma.done.wait [#allocation4], 1280  }
  0x88   :  { %448 = vsyncadd [#allocation4], 4294966016 }
  0x89   :  { %449 = dma.done.wait [#allocation10], 1280  }
  0x8a   :  { %450 = vsyncadd [#allocation10], 4294966016 }
  0x8b   :  { %305 = vsyncpa [#allocation3], 1 }
  0x8c   :  { %306 = vsyncpa [#allocation6], 1 }
  0x8d   :  { %307 = vsyncpa [#allocation4], 1 }
  0x8e   :  { %308 = vsyncpa [#allocation10], 1 }

</bundles_post_ra>
